<compile_context>
chip_gen: v6e
topology: v6e:2x2x1
jax: 0.10.0
libtpu: 0.0.40
codegen_flags: <defaults>
</compile_context>

<pallas_src>
import math
from typing import Any, Optional

import jax
import jax.numpy as jnp
from jax.experimental import pallas as pl
from jax.experimental.pallas import tpu as pltpu


# ----------------------------------------------------------------------------
# small helpers
# ----------------------------------------------------------------------------
def _cdiv(a: int, b: int) -> int:
    return (a + b - 1) // b


def _round_up(a: int, b: int) -> int:
    return _cdiv(a, b) * b


def _lowest(dtype):
    dtype = jnp.dtype(dtype)
    if jnp.issubdtype(dtype, jnp.floating):
        return -jnp.inf
    return int(jnp.iinfo(dtype).min)


def _bf16_native() -> bool:
    """bf16 VPU/EUP exists on v6e/v7x (and newer); upcast on v5e/v4/v3/v2."""
    try:
        kind = jax.devices()[0].device_kind.lower()
    except Exception:
        return False
    return not any(t in kind for t in ("v2", "v3", "v4", "v5e", "v5 lite", "v5lite"))


def _compute_dtype(dtype):
    dtype = jnp.dtype(dtype)
    if dtype == jnp.float32:
        return jnp.float32
    if dtype == jnp.bfloat16 and _bf16_native():
        return jnp.bfloat16
    return jnp.float32


def _legacy_softmax_dim(ndim: int) -> int:
    # mirrors torch's legacy implicit-dim choice for nn.Softmax(dim=None)
    return 0 if ndim in (0, 1, 3) else 1


def _pick_lanes(total: int):
    """Lane width that divides `total` (no HBM pad pass) when possible."""
    for cand in (512, 256, 128):
        if total % cand == 0:
            return cand, 0
    return 512, _round_up(total, 512) - total


_VMEM_LIMIT = 32 << 20      # safe on v5e/v6e/v7x (<= physical VMEM everywhere)
_EW_TARGET_BYTES = 2 << 20  # ~2 MiB elementwise block
_AM_TARGET_BYTES = 2 << 20  # ~2 MiB flat-argmax block
_BLOCK_BUDGET = 4 << 20     # ~4 MiB reduction input block


# ----------------------------------------------------------------------------
# Elementwise kernels (sigmoid / tanh) -- tiled, lane-dense, auto-pipelined
# ----------------------------------------------------------------------------
def _make_unary_kernel(fn, compute_dtype):
    def kernel(x_ref, o_ref):
        x = x_ref[...]
        if x.dtype != compute_dtype:
            x = x.astype(compute_dtype)
        o_ref[...] = fn(x).astype(o_ref.dtype)
    return kernel


def _elementwise(x: jax.Array, fn) -> jax.Array:
    if x.size == 0:
        return x
    shape, dtype = x.shape, x.dtype
    compute_dtype = _compute_dtype(dtype)
    itemsize = jnp.dtype(dtype).itemsize

    total = x.size
    lanes, pad = _pick_lanes(total)
    flat = x.reshape(-1)
    if pad:
        flat = jnp.pad(flat, (0, pad))
    rows = (total + pad) // lanes
    block_rows = min(rows, max(8, (_EW_TARGET_BYTES // (lanes * itemsize)) // 8 * 8))
    x2 = flat.reshape(rows, lanes)

    out = pl.pallas_call(
        _make_unary_kernel(fn, compute_dtype),
        grid=(_cdiv(rows, block_rows),),
        in_specs=[pl.BlockSpec((block_rows, lanes), lambda i: (i, 0))],
        out_specs=pl.BlockSpec((block_rows, lanes), lambda i: (i, 0)),
        out_shape=jax.ShapeDtypeStruct((rows, lanes), dtype),
        compiler_params=pltpu.CompilerParams(
            dimension_semantics=("parallel",),
            vmem_limit_bytes=_VMEM_LIMIT),
    )(x2)

    out = out.reshape(-1)
    if pad:
        out = out[:total]
    return out.reshape(shape)


# ----------------------------------------------------------------------------
# Reduction kernels over the middle axis of a (pre_tile, K, post_tile) block
# ----------------------------------------------------------------------------
def _softmax_mid_kernel(x_ref, o_ref):
    x = x_ref[...].astype(jnp.float32)                # (pt, K, qt)
    m = jnp.max(x, axis=1, keepdims=True)
    e = jnp.exp(x - m)
    s = jnp.sum(e, axis=1, keepdims=True)
    o_ref[...] = (e / s).astype(o_ref.dtype)          # exact divide (mem-bound)


def _logsoftmax_mid_kernel(x_ref, o_ref):
    x = x_ref[...].astype(jnp.float32)                # (pt, K, qt)
    m = jnp.max(x, axis=1, keepdims=True)
    sh = x - m
    lse = jnp.log(jnp.sum(jnp.exp(sh), axis=1, keepdims=True))
    o_ref[...] = (sh - lse).astype(o_ref.dtype)


def _argmax_mid_kernel(x_ref, o_ref):
    x = x_ref[...]                                    # (pt, K, qt)
    k = x.shape[1]
    idx = jax.lax.broadcasted_iota(jnp.int32, x.shape, 1)
    m = jnp.max(x, axis=1, keepdims=True)
    cand = jnp.where(x == m, idx, jnp.int32(k))       # first-max tie-break
    o_ref[...] = jnp.min(cand, axis=1, keepdims=True)  # (pt, 1, qt) int32


# ----------------------------------------------------------------------------
# Reduction kernels over the last (lane) axis of a (pre_tile, K) block
# ----------------------------------------------------------------------------
def _softmax_last_kernel(x_ref, o_ref):
    x = x_ref[...].astype(jnp.float32)                # (pt, K)
    m = jnp.max(x, axis=-1, keepdims=True)
    e = jnp.exp(x - m)
    s = jnp.sum(e, axis=-1, keepdims=True)
    o_ref[...] = (e / s).astype(o_ref.dtype)


def _logsoftmax_last_kernel(x_ref, o_ref):
    x = x_ref[...].astype(jnp.float32)                # (pt, K)
    m = jnp.max(x, axis=-1, keepdims=True)
    sh = x - m
    lse = jnp.log(jnp.sum(jnp.exp(sh), axis=-1, keepdims=True))
    o_ref[...] = (sh - lse).astype(o_ref.dtype)


def _argmax_last_kernel(x_ref, o_ref):
    x = x_ref[...]                                    # (pt, K)
    k = x.shape[-1]
    idx = jax.lax.broadcasted_iota(jnp.int32, x.shape, 1)
    m = jnp.max(x, axis=-1, keepdims=True)
    cand = jnp.where(x == m, idx, jnp.int32(k))
    o_ref[...] = jnp.min(cand, axis=-1, keepdims=True)  # compact (pt, 1) int32


# ----------------------------------------------------------------------------
# Reduction drivers (no HBM-side padding; partial edge blocks are Pallas-masked)
# ----------------------------------------------------------------------------
def _reduce_mid(x: jax.Array, dim: int, kind: str, drop: bool):
    shape = x.shape
    pre = math.prod(shape[:dim])
    k = shape[dim]
    post = math.prod(shape[dim + 1:])
    x3 = x.reshape(pre, k, post)

    itemsize = max(jnp.dtype(x.dtype).itemsize, 4)    # f32 compute
    if post >= 128:
        post_tile = min(512, (post // 128) * 128)     # lane-dense, mult of 128
        while post_tile > 128 and k * post_tile * itemsize > _BLOCK_BUDGET:
            post_tile -= 128
    else:
        post_tile = post                              # full dim (always legal)
    pre_tile = max(1, min(pre, _BLOCK_BUDGET // max(1, k * post_tile * itemsize)))

    grid = (_cdiv(pre, pre_tile), _cdiv(post, post_tile))
    in_spec = pl.BlockSpec((pre_tile, k, post_tile), lambda i, j: (i, 0, j))

    if drop:
        out_shape = jax.ShapeDtypeStruct((pre, 1, post), jnp.int32)
        out_spec = pl.BlockSpec((pre_tile, 1, post_tile), lambda i, j: (i, 0, j))
        kernel = _argmax_mid_kernel
    else:
        out_shape = jax.ShapeDtypeStruct((pre, k, post), x.dtype)
        out_spec = pl.BlockSpec((pre_tile, k, post_tile), lambda i, j: (i, 0, j))
        kernel = _softmax_mid_kernel if kind == "softmax" else _logsoftmax_mid_kernel

    out = pl.pallas_call(
        kernel,
        grid=grid,
        in_specs=[in_spec],
        out_specs=out_spec,
        out_shape=out_shape,
        compiler_params=pltpu.CompilerParams(
            dimension_semantics=("parallel", "parallel"),
            vmem_limit_bytes=_VMEM_LIMIT),
    )(x3)

    if drop:
        return out.reshape(shape[:dim] + shape[dim + 1:])
    return out.reshape(shape)


def _reduce_last(x: jax.Array, kind: str, drop: bool):
    shape = x.shape
    k = shape[-1]
    pre = math.prod(shape[:-1])
    x2 = x.reshape(pre, k)

    itemsize = max(jnp.dtype(x.dtype).itemsize, 4)
    pre_tile = max(1, min(pre, _BLOCK_BUDGET // max(1, k * itemsize)))
    if pre_tile < pre:
        pre_tile = max(8, (pre_tile // 8) * 8)        # sublane-aligned block rows
    grid = (_cdiv(pre, pre_tile),)
    in_spec = pl.BlockSpec((pre_tile, k), lambda i: (i, 0))

    if drop:
        out_shape = jax.ShapeDtypeStruct((pre, 1), jnp.int32)
        out_spec = pl.BlockSpec((pre_tile, 1), lambda i: (i, 0))
        kernel = _argmax_last_kernel
    else:
        out_shape = jax.ShapeDtypeStruct((pre, k), x.dtype)
        out_spec = pl.BlockSpec((pre_tile, k), lambda i: (i, 0))
        kernel = _softmax_last_kernel if kind == "softmax" else _logsoftmax_last_kernel

    out = pl.pallas_call(
        kernel,
        grid=grid,
        in_specs=[in_spec],
        out_specs=out_spec,
        out_shape=out_shape,
        compiler_params=pltpu.CompilerParams(
            dimension_semantics=("parallel",),
            vmem_limit_bytes=_VMEM_LIMIT),
    )(x2)

    if drop:
        return out.reshape(shape[:-1])
    return out.reshape(shape)


def _reduce_over_dim(x: jax.Array, dim: int, kind: str):
    d = dim % x.ndim
    drop = kind == "argmax"
    if d == x.ndim - 1:
        return _reduce_last(x, kind, drop)
    return _reduce_mid(x, d, kind, drop)


# ----------------------------------------------------------------------------
# Flattened argmax: tiled running (max, argmax) reduction with VMEM accumulators
# ----------------------------------------------------------------------------
def _make_argmax_flat_kernel(total: int, lanes: int):
    def kernel(x_ref, o_ref, vbest_ref, ibest_ref):
        b = pl.program_id(0)
        neg = _lowest(vbest_ref.dtype)

        @pl.when(b == 0)
        def _init():
            vbest_ref[...] = jnp.full(vbest_ref.shape, neg, dtype=vbest_ref.dtype)
            ibest_ref[...] = jnp.zeros(ibest_ref.shape, dtype=ibest_ref.dtype)

        x = x_ref[...].astype(vbest_ref.dtype)                 # (rows_blk, lanes)
        rows_blk = x.shape[0]
        row_ids = jax.lax.broadcasted_iota(jnp.int32, x.shape, 0)
        lane_ids = jax.lax.broadcasted_iota(jnp.int32, x.shape, 1)
        flat_ids = (b * rows_blk + row_ids) * lanes + lane_ids
        # mask lane padding and partial-edge-block garbage in-kernel (no HBM pad)
        x = jnp.where(flat_ids < total, x, neg)

        big = jnp.int32(2147483647)
        blk_max = jnp.max(x, axis=0, keepdims=True)             # (1, lanes)
        blk_idx = jnp.min(jnp.where(x == blk_max, flat_ids, big),
                          axis=0, keepdims=True)                # (1, lanes)

        better = blk_max > vbest_ref[...]                       # ties keep earlier idx
        vbest_ref[...] = jnp.where(better, blk_max, vbest_ref[...])
        ibest_ref[...] = jnp.where(better, blk_idx, ibest_ref[...])

        @pl.when(b == pl.num_programs(0) - 1)
        def _fin():
            v = vbest_ref[...]
            g = jnp.max(v, axis=1, keepdims=True)               # (1, 1)
            cand = jnp.where(v == g, ibest_ref[...], big)
            o_ref[...] = jnp.min(cand, axis=1, keepdims=True)   # (1, 1) int32
    return kernel


def _argmax_flat(x: jax.Array) -> jax.Array:
    total = x.size
    acc_dtype = jnp.float32 if jnp.issubdtype(x.dtype, jnp.floating) else jnp.int32
    itemsize = jnp.dtype(x.dtype).itemsize

    lanes, pad = _pick_lanes(total)
    flat = x.reshape(-1)
    if pad:
        flat = jnp.pad(flat, (0, pad))                 # pad values masked in-kernel
    rows = (total + pad) // lanes
    block_rows = min(rows, max(8, (_AM_TARGET_BYTES // (lanes * itemsize)) // 8 * 8))
    x2 = flat.reshape(rows, lanes)

    out = pl.pallas_call(
        _make_argmax_flat_kernel(total, lanes),
        grid=(_cdiv(rows, block_rows),),
        in_specs=[pl.BlockSpec((block_rows, lanes), lambda i: (i, 0))],
        out_specs=pl.BlockSpec((1, 1), lambda i: (0, 0)),
        out_shape=jax.ShapeDtypeStruct((1, 1), jnp.int32),
        scratch_shapes=[pltpu.VMEM((1, lanes), acc_dtype),
                        pltpu.VMEM((1, lanes), jnp.int32)],
        compiler_params=pltpu.CompilerParams(
            dimension_semantics=("arbitrary",),
            vmem_limit_bytes=_VMEM_LIMIT),
    )(x2)
    return out.reshape(())


# ----------------------------------------------------------------------------
# Activation module (mirrors the PyTorch wrapper)
# ----------------------------------------------------------------------------
class ArgMax:
    def __init__(self, dim: Optional[int] = None) -> None:
        self.dim = dim

    def __call__(self, x: jax.Array) -> jax.Array:
        if self.dim is None:
            return _argmax_flat(x)
        return _reduce_over_dim(x, self.dim, "argmax")


class Activation:
    def __init__(self, name: Any, **params: Any) -> None:
        self.name = name
        self.params = params
        if name is None or name == "identity":
            self._fn = lambda x: x                      # pure passthrough, no kernel
        elif name == "sigmoid":
            self._fn = lambda x: _elementwise(x, jax.nn.sigmoid)
        elif name == "tanh":
            self._fn = lambda x: _elementwise(x, jnp.tanh)
        elif name == "softmax2d":
            self._fn = lambda x: _reduce_over_dim(x, 1, "softmax")
        elif name == "softmax":
            dim = params.get("dim", None)
            self._fn = lambda x, _d=dim: _reduce_over_dim(
                x, _d if _d is not None else _legacy_softmax_dim(x.ndim), "softmax")
        elif name == "logsoftmax":
            dim = params.get("dim", None)
            self._fn = lambda x, _d=dim: _reduce_over_dim(
                x, _d if _d is not None else _legacy_softmax_dim(x.ndim), "logsoftmax")
        elif name == "argmax":
            self._fn = ArgMax(**params)
        elif name == "argmax2d":
            self._fn = ArgMax(dim=1, **params)
        elif callable(name):
            self._fn = name(**params)
        else:
            raise ValueError(
                "Activation should be callable or one of ['sigmoid', 'softmax2d',"
                " 'softmax', 'logsoftmax', 'tanh', 'argmax', 'argmax2d', None,"
                f" 'identity'], got {name}")

    def __call__(self, x: jax.Array) -> jax.Array:
        return self._fn(x)


# ----------------------------------------------------------------------------
# Demo / correctness check
# ----------------------------------------------------------------------------
if __name__ == "__main__":
    key = jax.random.PRNGKey(0)
    x = jax.random.normal(key, (2, 4, 16, 16), dtype=jnp.float32)     # NCHW
    x_odd = jax.random.normal(jax.random.PRNGKey(1), (3, 5, 7), dtype=jnp.float32)

    # identity (passthrough)
    y_id = jax.block_until_ready(Activation("identity")(x))
    assert jnp.array_equal(y_id, x)

    # sigmoid
    y_sig = jax.block_until_ready(Activation("sigmoid")(x))
    assert jnp.allclose(y_sig, jax.nn.sigmoid(x), atol=1e-6)
    y_sig_odd = jax.block_until_ready(Activation("sigmoid")(x_odd))   # ragged path
    assert jnp.allclose(y_sig_odd, jax.nn.sigmoid(x_odd), atol=1e-6)

    # tanh
    y_tanh = jax.block_until_ready(Activation("tanh")(x))
    assert jnp.allclose(y_tanh, jnp.tanh(x), atol=1e-6)

    # softmax2d (softmax over channel dim=1) -- exact division now
    y_sm2d = jax.block_until_ready(Activation("softmax2d")(x))
    assert jnp.allclose(y_sm2d, jax.nn.softmax(x, axis=1), atol=1e-5)

    # softmax over an explicit dim (mid path)
    y_sm = jax.block_until_ready(Activation("softmax", dim=1)(x))
    assert jnp.allclose(y_sm, jax.nn.softmax(x, axis=1), atol=1e-5)

    # softmax over the last dim (lane-dense special case)
    y_sm_last = jax.block_until_ready(Activation("softmax", dim=-1)(x))
    assert jnp.allclose(y_sm_last, jax.nn.softmax(x, axis=-1), atol=1e-5)

    # softmax on a ragged shape (small full-array block, no padding)
    y_sm_odd = jax.block_until_ready(Activation("softmax", dim=1)(x_odd))
    assert jnp.allclose(y_sm_odd, jax.nn.softmax(x_odd, axis=1), atol=1e-5)

    # logsoftmax over channel dim
    y_lsm = jax.block_until_ready(Activation("logsoftmax", dim=1)(x))
    assert jnp.allclose(y_lsm, jax.nn.log_softmax(x, axis=1), atol=1e-4)

    # argmax2d (argmax over channel dim) -> (N, H, W) int32
    y_am2d = jax.block_until_ready(Activation("argmax2d")(x))
    assert y_am2d.shape == (2, 16, 16)
    assert jnp.array_equal(y_am2d, jnp.argmax(x, axis=1).astype(jnp.int32))
    y_am2d_odd = jax.block_until_ready(Activation("argmax2d")(x_odd))
    assert jnp.array_equal(y_am2d_odd, jnp.argmax(x_odd, axis=1).astype(jnp.int32))

    # argmax over the last dim (lane-dense special case, compact output)
    y_am_last = jax.block_until_ready(Activation("argmax", dim=3)(x))
    assert jnp.array_equal(y_am_last, jnp.argmax(x, axis=3).astype(jnp.int32))

    # argmax with dim=None (flattened running reduction) -> scalar int32
    y_am = jax.block_until_ready(Activation("argmax")(x))
    assert jnp.array_equal(y_am, jnp.argmax(x).astype(jnp.int32))
    y_am_odd = jax.block_until_ready(Activation("argmax")(x_odd))
    assert jnp.array_equal(y_am_odd, jnp.argmax(x_odd).astype(jnp.int32))

    print("KERNEL_OK")
</pallas_src>

<mosaic_0001>
module attributes {stable_mosaic.version = 11 : i64} {
  func.func @kernel(%arg0: i32, %arg1: memref<4x512xf32, #tpu.memory_space<vmem>>, %arg2: memref<4x512xf32, #tpu.memory_space<vmem>>) attributes {dimension_semantics = [#tpu.dimension_semantics<parallel>], iteration_bounds = array<i64: 1>, scalar_prefetch = 0 : i64, scratch_operands = 0 : i64, tpu.core_type = #tpu.core_type<tc>, window_params = [{transform_indices = @transform_0, window_bounds = array<i64: 4, 512>}, {transform_indices = @transform_1, window_bounds = array<i64: 4, 512>}]} {
    %c0 = arith.constant 0 : index
    %c0_0 = arith.constant 0 : index
    %0 = vector.load %arg1[%c0, %c0_0] : memref<4x512xf32, #tpu.memory_space<vmem>>, vector<4x512xf32>
    %1 = arith.negf %0 : vector<4x512xf32>
    %2 = math.exp %1 : vector<4x512xf32>
    %cst = arith.constant 1.000000e+00 : f32
    %3 = vector.broadcast %cst : f32 to vector<4x512xf32>
    %4 = arith.addf %3, %2 : vector<4x512xf32>
    %5 = arith.divf %3, %4 : vector<4x512xf32>
    %c0_1 = arith.constant 0 : index
    %c0_2 = arith.constant 0 : index
    %6 = vector.load %arg2[%c0_1, %c0_2] : memref<4x512xf32, #tpu.memory_space<vmem>>, vector<4x512xf32>
    tpu.vector_store %arg2[%c0_1, %c0_2], %5 {strides = array<i32>} : memref<4x512xf32, #tpu.memory_space<vmem>>, vector<4x512xf32>,
    return
  }
  func.func @transform_0(%arg0: i32) -> (i32, i32) {
    %c0_i32 = arith.constant 0 : i32
    %c0_i32_0 = arith.constant 0 : i32
    return %arg0, %c0_i32 : i32, i32
  }
  func.func @transform_1(%arg0: i32) -> (i32, i32) {
    %c0_i32 = arith.constant 0 : i32
    %c0_i32_0 = arith.constant 0 : i32
    return %arg0, %c0_i32 : i32, i32
  }
}

</mosaic_0001>

<bundles_post_ra>
// kernel: tpu_custom_call.1
= control target key start
LH: loop header
LB: loop body
LE: loop exit
PB: predicated region body
PF: predicated region fallthrough
CT: control target
= control target key end

     0   :  { %6 = vsyncpa [#allocation3], 0  ;;  %s126_s0 = inlined_call_operand.hbm [shape: f32[4,512], index: 0, kind: input, shape index: {}]   ;;  %s127_s1 = inlined_call_operand.hbm [shape: f32[4,512], index: 1, kind: output, shape index: {}]  }
   0x1   :  { %7 = vsyncpa [#allocation4], 0  ;;  %s108_s6 = smov [#allocation2]  }
   0x2   :  { %s14_s7 = sshll.u32 %s108_s6, 4  ;;  %s15_s7 = int_to_ptr.vmem [resolvable:$true] %s14_s7 }
   0x3   :  { %s72_s8 = scalar_lea.vmem %s15_s7, 256  ;;  %p77_p1 = scmp.lt.s32.totalorder %s15_s7, %s15_s7 }
   0x4   :  { %p73_p0 = scmp.ne.s32.totalorder %s15_s7, %s72_s8  ;;  %p78_p2 = scmp.lt.s32.totalorder %s72_s8, %s72_s8 }
   0x6   :  { %p79_p3 = por %p78_p2, %p77_p1 }
   0x8   :  { %p80_p4 = pnand %p79_p3, %p73_p0 }
   0xa   :  { %83 = shalt.err (!%p80_p4)
}
   0xb   :  { %17 = dma.hbm_to_vmem [thread:$0]  %s126_s0, 256, %s15_s7, [#allocation3]  }
   0xc   :  { %104 = dma.done.wait [#allocation3], 256  }
   0xd   :  { %105 = vsyncadd [#allocation3], 4294967040  ;;  %v21_v0 = vld [vmem:[#allocation2] sm:$0xff]  ;;  %v22_v1 = vld [vmem:[#allocation2 + $0x8] sm:$0xff]  ;;  %s109_s11 = smov [#allocation5]  }
   0xe   :  { %v52_v2 = vmul.f32 -1.442695, %v21_v0  ;;  %v53_v3 = vmul.f32 -1.442695, %v22_v1  ;;  %s43_s12 = sshll.u32 %s109_s11, 4  ;;  %s44_s12 = int_to_ptr.vmem [resolvable:$true] %s43_s12 }
   0xf   :  { %s84_s0 = scalar_lea.vmem %s44_s12, 256  ;;  %p89_p6 = scmp.lt.s32.totalorder %s44_s12, %s44_s12 }
  0x10   :  { %56 = vpow2.f32 %v52_v2  ;;  %p85_p5 = scmp.ne.s32.totalorder %s44_s12, %s84_s0  ;;  %p90_p7 = scmp.lt.s32.totalorder %s84_s0, %s84_s0 }
  0x11   :  { %58 = vpow2.f32 %v53_v3 }
  0x12   :  { %p91_p8 = por %p90_p7, %p89_p6 }
  0x14   :  { %p92_p9 = pnand %p91_p8, %p85_p5 }
  0x1d   :  { %v57_v4 = vpop.eup %56 }
  0x1e   :  { %v59_v5 = vpop.eup %58  ;;  %v29_v6 = vadd.f32 1.0, %v57_v4 }
  0x1f   :  { %v30_v7 = vadd.f32 1.0, %v59_v5 }
  0x20   :  { %60 = vrcp.f32 %v29_v6 }
  0x21   :  { %62 = vrcp.f32 %v30_v7 }
  0x2d   :  { %v61_v8 = vpop.eup %60 }
  0x2e   :  { %v63_v9 = vpop.eup %62  ;;  %35 = vst [vmem:[#allocation5] sm:$0xff] %v61_v8 }
  0x2f   :  { %36 = vst [vmem:[#allocation5 + $0x8] sm:$0xff] %v63_v9 }
  0x30   :  { %95 = shalt.err (!%p92_p9)
}
  0x31   :  { %46 = dma.vmem_to_hbm [thread:$0]  %s44_s12, 256, %s127_s1, [#allocation4]  }
  0x32   :  { %106 = dma.done.wait [#allocation4], 256  }
  0x33   :  { %107 = vsyncadd [#allocation4], 4294967040 }
  0x34   :  { %50 = vsyncpa [#allocation3], 1 }
  0x35   :  { %51 = vsyncpa [#allocation4], 1 }

</bundles_post_ra>
